<compile_context>
chip_gen: v5e
topology: v5e:2x2
jax: 0.10.0
libtpu: 0.0.40
codegen_flags: <defaults>
</compile_context>

<pallas_src>
import functools

import jax
import jax.numpy as jnp
from jax import lax
from jax.experimental import pallas as pl
from jax.experimental.pallas import tpu as pltpu

_NEG_LARGE = -1e30  # finite "-inf" for masking padded vocab columns


def _round_up(x, m):
    return ((x + m - 1) // m) * m


def _use_gram(v_pad, d):
    # Gram path wins when ceil(V/128) <= 2*ceil(D/128): one MXU pass instead of two
    # per output tile, and the (V_pad, V_pad) Gram table stays small.
    return v_pad <= 2 * _round_up(d, 128)


def _masked_log_softmax(scores, v_real):
    v_pad = scores.shape[-1]
    if v_real < v_pad:
        col = lax.broadcasted_iota(jnp.int32, scores.shape, 1)
        scores = jnp.where(col < v_real, scores, _NEG_LARGE)
    m = jnp.max(scores, axis=-1, keepdims=True)
    shifted = scores - m
    lse = jnp.log(jnp.sum(jnp.exp(shifted), axis=-1, keepdims=True))
    return shifted - lse


def _weighted_onehot(idx_ref, w_ref, v_pad):
    """scat[b, v] = sum_c w[b,c] * [idx[b,c] == v]  (w already carries the 1/C mean)."""
    TB, C = idx_ref.shape
    idx = idx_ref[...]                       # (TB, C) int32
    w = w_ref[...]                           # (TB, C) f32
    lane_ids = lax.broadcasted_iota(jnp.int32, (TB, v_pad), 1)
    scat = jnp.zeros((TB, v_pad), jnp.float32)
    for c in range(C):                       # C is small & static -> unrolled (VPU)
        hit = idx[:, c:c + 1] == lane_ids
        scat = scat + jnp.where(hit, w[:, c:c + 1], 0.0)
    return scat


def _cbow_gram_kernel(idx_ref, w_ref, gram_ref, out_ref, *, v_real):
    """Small-V path: scores = scat @ (emb emb^T), a single MXU matmul."""
    v_pad = gram_ref.shape[0]
    scat = _weighted_onehot(idx_ref, w_ref, v_pad)
    scores = jnp.dot(scat.astype(gram_ref.dtype), gram_ref[...],
                     preferred_element_type=jnp.float32)
    out_ref[...] = _masked_log_softmax(scores, v_real).astype(out_ref.dtype)


def _cbow_2mm_kernel(idx_ref, w_ref, emb_ref, out_ref, *, v_real):
    """Large-V path: hidden = scat @ emb ; scores = hidden @ emb^T (dot_general NT,
    no transposed resident copy of the table)."""
    v_pad, _ = emb_ref.shape
    scat = _weighted_onehot(idx_ref, w_ref, v_pad)
    emb = emb_ref[...]
    hidden = jnp.dot(scat.astype(emb.dtype), emb,
                     preferred_element_type=jnp.float32)
    scores = lax.dot_general(hidden.astype(emb.dtype), emb,
                             (((1,), (1,)), ((), ())),
                             preferred_element_type=jnp.float32)
    out_ref[...] = _masked_log_softmax(scores, v_real).astype(out_ref.dtype)


def _vmem_limit_bytes(resident_bytes, stream_bytes):
    try:
        phys = int(pltpu.get_tpu_info().vmem_capacity_bytes)
    except Exception:
        phys = 128 * 2 ** 20
    cap = int(phys * 0.85)                   # leave headroom for compiler scratch
    need = resident_bytes + stream_bytes + (4 << 20)
    return int(min(max(need, 16 << 20), cap))


def cbow_single_weights_forward(inputs, weights, emb, *, block_b=128,
                                table_dtype=jnp.bfloat16, out_dtype=jnp.float32):
    """inputs: (B, C) int ids; weights: (B, C) row-normalized context weights;
    emb: (V, D) f32 embedding table  ->  (B, V, 1) log-probs (out_dtype)."""
    B, C = inputs.shape
    V, D = emb.shape
    V_pad = max(_round_up(V, 128), 128)      # lane-dense vocab axis

    # Batch tile: multiple of 8; ensure >= 2 grid steps when B allows it so the
    # "parallel" batch axis can shard across both TensorCores on v7x.
    TB = min(int(block_b), _round_up(B, 8))
    if _round_up(B, TB) // TB < 2:
        tb_half = _round_up(-(-B // 2), 8)
        if tb_half < TB:
            TB = tb_half
    B_pad = _round_up(B, TB)
    n_blocks = B_pad // TB

    # Pad batch rows (index 0, weight 0). Fold the 1/C mean into the weights so the
    # kernel does no per-(TB, V) rescale.
    idx = jnp.zeros((B_pad, C), jnp.int32).at[:B].set(inputs.astype(jnp.int32))
    w = jnp.zeros((B_pad, C), jnp.float32).at[:B].set(
        weights.astype(jnp.float32) / float(C))

    # One-time padded bf16 table (zero rows for padded vocab entries).
    emb_c = jnp.zeros((V_pad, D), table_dtype).at[:V].set(emb.astype(table_dtype))

    if _use_gram(V_pad, D):
        table = jnp.dot(emb_c, emb_c.T,
                        preferred_element_type=jnp.float32).astype(table_dtype)
        kernel = functools.partial(_cbow_gram_kernel, v_real=V)
    else:
        table = emb_c
        kernel = functools.partial(_cbow_2mm_kernel, v_real=V)
    # TODO(synk): for very large V (V >> D, many thousands) a scalar-prefetch DMA
    # gather of the C*TB embedding rows would halve MXU work vs the one-hot matmul.

    table_shape = table.shape

    def _run(buffered):
        if buffered:
            table_spec = pl.BlockSpec(table_shape, lambda i: (0,) * len(table_shape),
                                      pipeline_mode=pl.Buffered(1))
            table_copies = 1
        else:
            table_spec = pl.BlockSpec(table_shape, lambda i: (0,) * len(table_shape))
            table_copies = 2
        resident_bytes = table_copies * int(table.size) * table.dtype.itemsize
        stream_bytes = 2 * (2 * TB * C * 4 + TB * V_pad * jnp.dtype(out_dtype).itemsize)
        return pl.pallas_call(
            kernel,
            out_shape=jax.ShapeDtypeStruct((B_pad, V_pad), out_dtype),
            grid=(n_blocks,),
            in_specs=[
                pl.BlockSpec((TB, C), lambda i: (i, 0)),   # context ids block
                pl.BlockSpec((TB, C), lambda i: (i, 0)),   # context weights (w / C)
                table_spec,                                # resident table (Gram or emb)
            ],
            out_specs=pl.BlockSpec((TB, V_pad), lambda i: (i, 0)),
            compiler_params=pltpu.CompilerParams(
                dimension_semantics=("parallel",),
                vmem_limit_bytes=_vmem_limit_bytes(resident_bytes, stream_bytes),
            ),
        )(idx, w, table)

    try:
        out = _run(True)
    except Exception:
        # pipeline_mode / pl.Buffered(1) not supported on this jax build -> default pipelining.
        out = _run(False)

    return out[:B, :V, None].astype(out_dtype)   # (B, V, 1) like the PyTorch output


def reference_f32(inputs, weights, emb):
    """Pure-JAX f32 reference mirroring the PyTorch forward (f64 -> f32)."""
    temp = emb[inputs] * weights[:, :, None]              # (B, C, D)
    hidden = jnp.mean(temp, axis=1)                       # (B, D)
    scores = jnp.einsum("vd,bd->bv", emb, hidden)         # (B, V)
    return jax.nn.log_softmax(scores, axis=-1)[:, :, None]


def reference_quantized(inputs, weights, emb, *, table_dtype=jnp.bfloat16):
    """Reference mirroring the kernel math (bf16 tables, f32 accumulation, same path)."""
    B, C = inputs.shape
    V, D = emb.shape
    V_pad = max(_round_up(V, 128), 128)
    emb_c = emb.astype(table_dtype)
    onehot = jax.nn.one_hot(inputs, V, dtype=jnp.float32)                  # (B, C, V)
    scat = jnp.einsum("bcv,bc->bv", onehot, weights.astype(jnp.float32) / C)
    scat = scat.astype(table_dtype)
    if _use_gram(V_pad, D):
        gram = jnp.dot(emb_c, emb_c.T,
                       preferred_element_type=jnp.float32).astype(table_dtype)
        scores = jnp.dot(scat, gram, preferred_element_type=jnp.float32)
    else:
        hidden = jnp.dot(scat, emb_c, preferred_element_type=jnp.float32)
        scores = jnp.dot(hidden.astype(table_dtype), emb_c.T,
                         preferred_element_type=jnp.float32)
    return jax.nn.log_softmax(scores, axis=-1)[:, :, None]


def _demo_case(key, n_tickers, embedding_dim, batch, context):
    k_emb, k_idx, k_y, k_cnt = jax.random.split(key, 4)
    emb = jax.random.normal(k_emb, (n_tickers, embedding_dim), dtype=jnp.float32)
    inputs = jax.random.randint(k_idx, (batch, context), 0, n_tickers, dtype=jnp.int32)
    y_batch = jax.random.randint(k_y, (batch,), 0, n_tickers, dtype=jnp.int32)
    counts = jax.random.uniform(k_cnt, (n_tickers, n_tickers), jnp.float32, 0.5, 10.0)
    # TODO(synk): the pandas weights_df / idx2ticker lookup has no Pallas equivalent;
    # reproduced as a dense gather outside the kernel:
    #   w[b, c] = counts[inputs[b, c], y_batch[b]], then row-normalized.
    w = counts[inputs, y_batch[:, None]]
    w = w / jnp.sum(w, axis=1, keepdims=True)
    return inputs, w, emb


if __name__ == "__main__":
    key = jax.random.PRNGKey(0)
    k1, k2 = jax.random.split(key)

    # Case 1: tiny shapes from the module (small V -> Gram path, V lane-padded 16 -> 128).
    inputs1, w1, emb1 = _demo_case(k1, n_tickers=16, embedding_dim=32, batch=2, context=4)
    out1 = cbow_single_weights_forward(inputs1, w1, emb1)
    jax.block_until_ready(out1)
    assert out1.shape == (2, 16, 1)
    assert jnp.allclose(out1, reference_quantized(inputs1, w1, emb1),
                        atol=1e-2, rtol=1e-2), "case1: mismatch vs quantized reference"
    assert jnp.allclose(out1, reference_f32(inputs1, w1, emb1),
                        atol=1e-1, rtol=5e-2), "case1: mismatch vs f32 reference"

    # Case 2: larger vocab (two-matmul path, V padded 300 -> 384, >= 2 batch blocks).
    inputs2, w2, emb2 = _demo_case(k2, n_tickers=300, embedding_dim=32, batch=20, context=5)
    out2 = cbow_single_weights_forward(inputs2, w2, emb2)
    jax.block_until_ready(out2)
    assert out2.shape == (20, 300, 1)
    assert jnp.allclose(out2, reference_quantized(inputs2, w2, emb2),
                        atol=1e-2, rtol=1e-2), "case2: mismatch vs quantized reference"
    assert jnp.allclose(out2, reference_f32(inputs2, w2, emb2),
                        atol=1e-1, rtol=5e-2), "case2: mismatch vs f32 reference"

    print("KERNEL_OK")
</pallas_src>

<mosaic_0001>
module attributes {stable_mosaic.version = 11 : i64} {
  func.func @_cbow_gram_kernel(%arg0: i32, %arg1: memref<8x4xi32, #tpu.memory_space<vmem>>, %arg2: memref<8x4xf32, #tpu.memory_space<vmem>>, %arg3: memref<128x128xbf16, #tpu.memory_space<vmem>>, %arg4: memref<8x128xf32, #tpu.memory_space<vmem>>) attributes {dimension_semantics = [#tpu.dimension_semantics<parallel>], iteration_bounds = array<i64: 1>, scalar_prefetch = 0 : i64, scratch_operands = 0 : i64, tpu.core_type = #tpu.core_type<tc>, window_params = [{transform_indices = @transform_0, window_bounds = array<i64: 8, 4>}, {transform_indices = @transform_1, window_bounds = array<i64: 8, 4>}, {pipeline_mode = #tpu.pipeline_mode<synchronous>, transform_indices = @transform_2, window_bounds = array<i64: 128, 128>}, {transform_indices = @transform_3, window_bounds = array<i64: 8, 128>}]} {
    %c0 = arith.constant 0 : index
    %c0_0 = arith.constant 0 : index
    %0 = vector.load %arg1[%c0, %c0_0] : memref<8x4xi32, #tpu.memory_space<vmem>>, vector<8x4xi32>
    %c0_1 = arith.constant 0 : index
    %c0_2 = arith.constant 0 : index
    %1 = vector.load %arg2[%c0_1, %c0_2] : memref<8x4xf32, #tpu.memory_space<vmem>>, vector<8x4xf32>
    %2 = tpu.iota {dimensions = array<i32: 1>} : vector<8x128xi32>
    %cst = arith.constant 0.000000e+00 : f32
    %3 = vector.broadcast %cst : f32 to vector<8x128xf32>
    %4 = vector.extract_strided_slice %0 {offsets = [0, 0], sizes = [8, 1], strides = [1, 1]} : vector<8x4xi32> to vector<8x1xi32>
    %5 = vector.broadcast %4 : vector<8x1xi32> to vector<8x128xi32>
    %6 = arith.cmpi eq, %5, %2 : vector<8x128xi32>
    %7 = vector.extract_strided_slice %1 {offsets = [0, 0], sizes = [8, 1], strides = [1, 1]} : vector<8x4xf32> to vector<8x1xf32>
    %cst_3 = arith.constant 0.000000e+00 : f32
    %8 = vector.shape_cast %7 : vector<8x1xf32> to vector<8x1xf32>
    %9 = vector.broadcast %8 : vector<8x1xf32> to vector<8x128xf32>
    %10 = vector.broadcast %cst_3 : f32 to vector<8x128xf32>
    %11 = arith.select %6, %9, %10 : vector<8x128xi1>, vector<8x128xf32>
    %12 = arith.addf %3, %11 : vector<8x128xf32>
    %13 = vector.extract_strided_slice %0 {offsets = [0, 1], sizes = [8, 1], strides = [1, 1]} : vector<8x4xi32> to vector<8x1xi32>
    %14 = vector.broadcast %13 : vector<8x1xi32> to vector<8x128xi32>
    %15 = arith.cmpi eq, %14, %2 : vector<8x128xi32>
    %16 = vector.extract_strided_slice %1 {offsets = [0, 1], sizes = [8, 1], strides = [1, 1]} : vector<8x4xf32> to vector<8x1xf32>
    %cst_4 = arith.constant 0.000000e+00 : f32
    %17 = vector.shape_cast %16 : vector<8x1xf32> to vector<8x1xf32>
    %18 = vector.broadcast %17 : vector<8x1xf32> to vector<8x128xf32>
    %19 = vector.broadcast %cst_4 : f32 to vector<8x128xf32>
    %20 = arith.select %15, %18, %19 : vector<8x128xi1>, vector<8x128xf32>
    %21 = arith.addf %12, %20 : vector<8x128xf32>
    %22 = vector.extract_strided_slice %0 {offsets = [0, 2], sizes = [8, 1], strides = [1, 1]} : vector<8x4xi32> to vector<8x1xi32>
    %23 = vector.broadcast %22 : vector<8x1xi32> to vector<8x128xi32>
    %24 = arith.cmpi eq, %23, %2 : vector<8x128xi32>
    %25 = vector.extract_strided_slice %1 {offsets = [0, 2], sizes = [8, 1], strides = [1, 1]} : vector<8x4xf32> to vector<8x1xf32>
    %cst_5 = arith.constant 0.000000e+00 : f32
    %26 = vector.shape_cast %25 : vector<8x1xf32> to vector<8x1xf32>
    %27 = vector.broadcast %26 : vector<8x1xf32> to vector<8x128xf32>
    %28 = vector.broadcast %cst_5 : f32 to vector<8x128xf32>
    %29 = arith.select %24, %27, %28 : vector<8x128xi1>, vector<8x128xf32>
    %30 = arith.addf %21, %29 : vector<8x128xf32>
    %31 = vector.extract_strided_slice %0 {offsets = [0, 3], sizes = [8, 1], strides = [1, 1]} : vector<8x4xi32> to vector<8x1xi32>
    %32 = vector.broadcast %31 : vector<8x1xi32> to vector<8x128xi32>
    %33 = arith.cmpi eq, %32, %2 : vector<8x128xi32>
    %34 = vector.extract_strided_slice %1 {offsets = [0, 3], sizes = [8, 1], strides = [1, 1]} : vector<8x4xf32> to vector<8x1xf32>
    %cst_6 = arith.constant 0.000000e+00 : f32
    %35 = vector.shape_cast %34 : vector<8x1xf32> to vector<8x1xf32>
    %36 = vector.broadcast %35 : vector<8x1xf32> to vector<8x128xf32>
    %37 = vector.broadcast %cst_6 : f32 to vector<8x128xf32>
    %38 = arith.select %33, %36, %37 : vector<8x128xi1>, vector<8x128xf32>
    %39 = arith.addf %30, %38 : vector<8x128xf32>
    %40 = arith.truncf %39 : vector<8x128xf32> to vector<8x128xbf16>
    %c0_7 = arith.constant 0 : index
    %c0_8 = arith.constant 0 : index
    %41 = vector.load %arg3[%c0_7, %c0_8] : memref<128x128xbf16, #tpu.memory_space<vmem>>, vector<128x128xbf16>
    %cst_9 = arith.constant dense<0.000000e+00> : vector<8x128xf32>
    %42 = tpu.matmul %40, %41, %cst_9 {dimension_numbers = #tpu.dot_dimension_numbers<[1], [0], [0], [1], [0, 0, 1, 1], [], []>} : vector<8x128xbf16>, vector<128x128xbf16>, vector<8x128xf32> -> vector<8x128xf32>
    %43 = tpu.iota {dimensions = array<i32: 1>} : vector<8x128xi32>
    %c16_i32 = arith.constant 16 : i32
    %44 = vector.broadcast %c16_i32 : i32 to vector<8x128xi32>
    %45 = arith.cmpi slt, %43, %44 : vector<8x128xi32>
    %cst_10 = arith.constant -1.000000e+30 : f32
    %46 = vector.broadcast %cst_10 : f32 to vector<8x128xf32>
    %47 = arith.select %45, %42, %46 : vector<8x128xi1>, vector<8x128xf32>
    %cst_11 = arith.constant dense<0xFF800000> : vector<8xf32>
    %48 = vector.multi_reduction <maximumf>, %47, %cst_11 [1] : vector<8x128xf32> to vector<8xf32>
    %49 = vector.shape_cast %48 : vector<8xf32> to vector<8x1xf32>
    %50 = vector.broadcast %49 : vector<8x1xf32> to vector<8x128xf32>
    %51 = arith.subf %47, %50 : vector<8x128xf32>
    %52 = math.exp %51 : vector<8x128xf32>
    %cst_12 = arith.constant dense<0.000000e+00> : vector<8xf32>
    %53 = vector.multi_reduction <add>, %52, %cst_12 [1] : vector<8x128xf32> to vector<8xf32>
    %54 = vector.shape_cast %53 : vector<8xf32> to vector<8x1xf32>
    %55 = math.log %54 : vector<8x1xf32>
    %56 = vector.broadcast %55 : vector<8x1xf32> to vector<8x128xf32>
    %57 = arith.subf %51, %56 : vector<8x128xf32>
    %c0_13 = arith.constant 0 : index
    %c0_14 = arith.constant 0 : index
    %58 = vector.load %arg4[%c0_13, %c0_14] : memref<8x128xf32, #tpu.memory_space<vmem>>, vector<8x128xf32>
    tpu.vector_store %arg4[%c0_13, %c0_14], %57 {strides = array<i32>} : memref<8x128xf32, #tpu.memory_space<vmem>>, vector<8x128xf32>,
    return
  }
  func.func @transform_0(%arg0: i32) -> (i32, i32) {
    %c0_i32 = arith.constant 0 : i32
    %c0_i32_0 = arith.constant 0 : i32
    return %arg0, %c0_i32 : i32, i32
  }
  func.func @transform_1(%arg0: i32) -> (i32, i32) {
    %c0_i32 = arith.constant 0 : i32
    %c0_i32_0 = arith.constant 0 : i32
    return %arg0, %c0_i32 : i32, i32
  }
  func.func @transform_2(%arg0: i32) -> (i32, i32) {
    %c0_i32 = arith.constant 0 : i32
    %c0_i32_0 = arith.constant 0 : i32
    %c0_i32_1 = arith.constant 0 : i32
    return %c0_i32, %c0_i32_0 : i32, i32
  }
  func.func @transform_3(%arg0: i32) -> (i32, i32) {
    %c0_i32 = arith.constant 0 : i32
    %c0_i32_0 = arith.constant 0 : i32
    return %arg0, %c0_i32 : i32, i32
  }
}

module attributes {stable_mosaic.version = 11 : i64} {
  func.func @_cbow_gram_kernel(%arg0: i32, %arg1: memref<8x4xi32, #tpu.memory_space<vmem>>, %arg2: memref<8x4xf32, #tpu.memory_space<vmem>>, %arg3: memref<128x128xbf16, #tpu.memory_space<vmem>>, %arg4: memref<8x128xf32, #tpu.memory_space<vmem>>) attributes {dimension_semantics = [#tpu.dimension_semantics<parallel>], iteration_bounds = array<i64: 1>, scalar_prefetch = 0 : i64, scratch_operands = 0 : i64, tpu.core_type = #tpu.core_type<tc>, window_params = [{transform_indices = @transform_0, window_bounds = array<i64: 8, 4>}, {transform_indices = @transform_1, window_bounds = array<i64: 8, 4>}, {pipeline_mode = #tpu.pipeline_mode<synchronous>, transform_indices = @transform_2, window_bounds = array<i64: 128, 128>}, {transform_indices = @transform_3, window_bounds = array<i64: 8, 128>}]} {
    %c0 = arith.constant 0 : index
    %c0_0 = arith.constant 0 : index
    %0 = vector.load %arg1[%c0, %c0_0] : memref<8x4xi32, #tpu.memory_space<vmem>>, vector<8x4xi32>
    %c0_1 = arith.constant 0 : index
    %c0_2 = arith.constant 0 : index
    %1 = vector.load %arg2[%c0_1, %c0_2] : memref<8x4xf32, #tpu.memory_space<vmem>>, vector<8x4xf32>
    %2 = tpu.iota {dimensions = array<i32: 1>} : vector<8x128xi32>
    %cst = arith.constant 0.000000e+00 : f32
    %3 = vector.broadcast %cst : f32 to vector<8x128xf32>
    %4 = vector.extract_strided_slice %0 {offsets = [0, 0], sizes = [8, 1], strides = [1, 1]} : vector<8x4xi32> to vector<8x1xi32>
    %5 = vector.broadcast %4 : vector<8x1xi32> to vector<8x128xi32>
    %6 = arith.cmpi eq, %5, %2 : vector<8x128xi32>
    %7 = vector.extract_strided_slice %1 {offsets = [0, 0], sizes = [8, 1], strides = [1, 1]} : vector<8x4xf32> to vector<8x1xf32>
    %cst_3 = arith.constant 0.000000e+00 : f32
    %8 = vector.shape_cast %7 : vector<8x1xf32> to vector<8x1xf32>
    %9 = vector.broadcast %8 : vector<8x1xf32> to vector<8x128xf32>
    %10 = vector.broadcast %cst_3 : f32 to vector<8x128xf32>
    %11 = arith.select %6, %9, %10 : vector<8x128xi1>, vector<8x128xf32>
    %12 = arith.addf %3, %11 : vector<8x128xf32>
    %13 = vector.extract_strided_slice %0 {offsets = [0, 1], sizes = [8, 1], strides = [1, 1]} : vector<8x4xi32> to vector<8x1xi32>
    %14 = vector.broadcast %13 : vector<8x1xi32> to vector<8x128xi32>
    %15 = arith.cmpi eq, %14, %2 : vector<8x128xi32>
    %16 = vector.extract_strided_slice %1 {offsets = [0, 1], sizes = [8, 1], strides = [1, 1]} : vector<8x4xf32> to vector<8x1xf32>
    %cst_4 = arith.constant 0.000000e+00 : f32
    %17 = vector.shape_cast %16 : vector<8x1xf32> to vector<8x1xf32>
    %18 = vector.broadcast %17 : vector<8x1xf32> to vector<8x128xf32>
    %19 = vector.broadcast %cst_4 : f32 to vector<8x128xf32>
    %20 = arith.select %15, %18, %19 : vector<8x128xi1>, vector<8x128xf32>
    %21 = arith.addf %12, %20 : vector<8x128xf32>
    %22 = vector.extract_strided_slice %0 {offsets = [0, 2], sizes = [8, 1], strides = [1, 1]} : vector<8x4xi32> to vector<8x1xi32>
    %23 = vector.broadcast %22 : vector<8x1xi32> to vector<8x128xi32>
    %24 = arith.cmpi eq, %23, %2 : vector<8x128xi32>
    %25 = vector.extract_strided_slice %1 {offsets = [0, 2], sizes = [8, 1], strides = [1, 1]} : vector<8x4xf32> to vector<8x1xf32>
    %cst_5 = arith.constant 0.000000e+00 : f32
    %26 = vector.shape_cast %25 : vector<8x1xf32> to vector<8x1xf32>
    %27 = vector.broadcast %26 : vector<8x1xf32> to vector<8x128xf32>
    %28 = vector.broadcast %cst_5 : f32 to vector<8x128xf32>
    %29 = arith.select %24, %27, %28 : vector<8x128xi1>, vector<8x128xf32>
    %30 = arith.addf %21, %29 : vector<8x128xf32>
    %31 = vector.extract_strided_slice %0 {offsets = [0, 3], sizes = [8, 1], strides = [1, 1]} : vector<8x4xi32> to vector<8x1xi32>
    %32 = vector.broadcast %31 : vector<8x1xi32> to vector<8x128xi32>
    %33 = arith.cmpi eq, %32, %2 : vector<8x128xi32>
    %34 = vector.extract_strided_slice %1 {offsets = [0, 3], sizes = [8, 1], strides = [1, 1]} : vector<8x4xf32> to vector<8x1xf32>
    %cst_6 = arith.constant 0.000000e+00 : f32
    %35 = vector.shape_cast %34 : vector<8x1xf32> to vector<8x1xf32>
    %36 = vector.broadcast %35 : vector<8x1xf32> to vector<8x128xf32>
    %37 = vector.broadcast %cst_6 : f32 to vector<8x128xf32>
    %38 = arith.select %33, %36, %37 : vector<8x128xi1>, vector<8x128xf32>
    %39 = arith.addf %30, %38 : vector<8x128xf32>
    %40 = arith.truncf %39 : vector<8x128xf32> to vector<8x128xbf16>
    %c0_7 = arith.constant 0 : index
    %c0_8 = arith.constant 0 : index
    %41 = vector.load %arg3[%c0_7, %c0_8] : memref<128x128xbf16, #tpu.memory_space<vmem>>, vector<128x128xbf16>
    %cst_9 = arith.constant dense<0.000000e+00> : vector<8x128xf32>
    %42 = tpu.matmul %40, %41, %cst_9 {dimension_numbers = #tpu.dot_dimension_numbers<[1], [0], [0], [1], [0, 0, 1, 1], [], []>} : vector<8x128xbf16>, vector<128x128xbf16>, vector<8x128xf32> -> vector<8x128xf32>
    %43 = tpu.iota {dimensions = array<i32: 1>} : vector<8x128xi32>
    %c16_i32 = arith.constant 16 : i32
    %44 = vector.broadcast %c16_i32 : i32 to vector<8x128xi32>
    %45 = arith.cmpi slt, %43, %44 : vector<8x128xi32>
    %cst_10 = arith.constant -1.000000e+30 : f32
    %46 = vector.broadcast %cst_10 : f32 to vector<8x128xf32>
    %47 = arith.select %45, %42, %46 : vector<8x128xi1>, vector<8x128xf32>
    %cst_11 = arith.constant dense<0xFF800000> : vector<8xf32>
    %48 = vector.multi_reduction <maximumf>, %47, %cst_11 [1] : vector<8x128xf32> to vector<8xf32>
    %49 = vector.shape_cast %48 : vector<8xf32> to vector<8x1xf32>
    %50 = vector.broadcast %49 : vector<8x1xf32> to vector<8x128xf32>
    %51 = arith.subf %47, %50 : vector<8x128xf32>
    %52 = math.exp %51 : vector<8x128xf32>
    %cst_12 = arith.constant dense<0.000000e+00> : vector<8xf32>
    %53 = vector.multi_reduction <add>, %52, %cst_12 [1] : vector<8x128xf32> to vector<8xf32>
    %54 = vector.shape_cast %53 : vector<8xf32> to vector<8x1xf32>
    %55 = math.log %54 : vector<8x1xf32>
    %56 = vector.broadcast %55 : vector<8x1xf32> to vector<8x128xf32>
    %57 = arith.subf %51, %56 : vector<8x128xf32>
    %c0_13 = arith.constant 0 : index
    %c0_14 = arith.constant 0 : index
    %58 = vector.load %arg4[%c0_13, %c0_14] : memref<8x128xf32, #tpu.memory_space<vmem>>, vector<8x128xf32>
    tpu.vector_store %arg4[%c0_13, %c0_14], %57 {strides = array<i32>} : memref<8x128xf32, #tpu.memory_space<vmem>>, vector<8x128xf32>,
    return
  }
  func.func @transform_0(%arg0: i32) -> (i32, i32) {
    %c0_i32 = arith.constant 0 : i32
    %c0_i32_0 = arith.constant 0 : i32
    return %arg0, %c0_i32 : i32, i32
  }
  func.func @transform_1(%arg0: i32) -> (i32, i32) {
    %c0_i32 = arith.constant 0 : i32
    %c0_i32_0 = arith.constant 0 : i32
    return %arg0, %c0_i32 : i32, i32
  }
  func.func @transform_2(%arg0: i32) -> (i32, i32) {
    %c0_i32 = arith.constant 0 : i32
    %c0_i32_0 = arith.constant 0 : i32
    %c0_i32_1 = arith.constant 0 : i32
    return %c0_i32, %c0_i32_0 : i32, i32
  }
  func.func @transform_3(%arg0: i32) -> (i32, i32) {
    %c0_i32 = arith.constant 0 : i32
    %c0_i32_0 = arith.constant 0 : i32
    return %arg0, %c0_i32 : i32, i32
  }
}

</mosaic_0001>

<bundles_post_ra>
// kernel: tpu_custom_call.1
= control target key start
LH: loop header
LB: loop body
LE: loop exit
PB: predicated region body
PF: predicated region fallthrough
CT: control target
= control target key end

     0   :  { %8 = vsyncpa [#allocation3], 0  ;;  %s336_s0 = inlined_call_operand.vmem [shape: s32[8,4], index: 0, kind: input, shape index: {}]   ;;  %s337_s1 = inlined_call_operand.vmem [shape: f32[8,4], index: 1, kind: input, shape index: {}]   ;;  %s338_s2 = inlined_call_operand.hbm [shape: bf16[128,128], index: 2, kind: input, shape index: {}]   ;;  %s339_s3 = inlined_call_operand.hbm [shape: f32[8,128], index: 3, kind: output, shape index: {}]  }
   0x1   :  { %9 = vsyncpa [#allocation4], 0  ;;  %s18_s14 = sshll.u32 %s338_s2, 4  ;;  %s296_s15 = smov [#allocation2]   ;;  %s19_s14 = int_to_ptr.hbm [resolvable:$true] %s18_s14 }
   0x2   :  { %s20_s16 = sshll.u32 %s296_s15, 4  ;;  %s297_s17 = smov 64   ;;  %s21_s16 = int_to_ptr.vmem [resolvable:$true] %s20_s16 }
   0x3   :  { %s298_s18 = smov 4  }
   0x4   :  { %26 = dma.hbm_to_vmem [thread:$0]  %s19_s14, 1024, %s21_s16, [#allocation3], %s297_s17, %s297_s17, %s298_s18  }
   0x5   :  { %292 = dma.done.wait [#allocation3], 1024  }
   0x6   :  { %293 = vsyncadd [#allocation3], 4294966272  ;;  %v299_v0 = vmov 0   ;;  %v300_v1 = vmov 2   ;;  %v32_v2 = vld [vmem:[%s337_s1] sm:$0xff]  ;;  %v223_v4 = vld [vmem:[#allocation2 + $0x38] sm:$0xff]  ;;  %v33_v17 = vlaneseq }
   0x7   :  { %234 = vset.pattern.permute.xlu1 %v299_v0  ;;  %232 = vset.pattern.permute.xlu0 %v299_v0  ;;  %v31_v3 = vld [vmem:[%s336_s0] sm:$0xff]  ;;  %v301_v5 = vmov 1   ;;  %v302_v6 = vmov 3   ;;  %v222_v7 = vld [vmem:[#allocation2 + $0x30] sm:$0xff]  ;;  %v221_v8 = vld [vmem:[#allocation2 + $0x28] sm:$0xff]  ;;  %s303_s0 = smov [#allocation5]  }
   0x8   :  { %236 = vset.pattern.permute.xlu2 %v300_v1  ;;  %41 = vperm.xlu1 %234, %v32_v2   ;;  %v220_v9 = vld [vmem:[#allocation2 + $0x20] sm:$0xff]  ;;  %v219_v10 = vld [vmem:[#allocation2 + $0x18] sm:$0xff]  ;;  %v218_v11 = vld [vmem:[#allocation2 + $0x10] sm:$0xff]  ;;  %v34_v18 = vand.u32 127, %v33_v17  ;;  %s172_s1 = sshll.u32 %s303_s0, 4  ;;  %s174_s24 = sshll.u32 %s339_s3, 4  ;;  %s173_s1 = int_to_ptr.vmem [resolvable:$true] %s172_s1  ;;  %s175_s24 = int_to_ptr.hbm [resolvable:$true] %s174_s24 }
   0x9   :  { %36 = vperm.xlu0 %232, %v31_v3   ;;  %57 = vperm.xlu2 %236, %v31_v3   ;;  %v217_v12 = vld [vmem:[#allocation2 + $0x8] sm:$0xff]  ;;  %v216_v13 = vld [vmem:[#allocation2] sm:$0xff] }
   0xa   :  { %141 = vmatpush.bf16.msra.mxu0 %v223_v4  ;;  %vm154_vm4 = vcmp.lt.s32.totalorder %v34_v18, 16 }
   0xe   :  { %142 = vmatpush.bf16.msra.mxu0 %v222_v7 }
  0x10   :  { %235 = vset.pattern.permute.xlu1 %v301_v5 }
  0x11   :  { %233 = vset.pattern.permute.xlu0 %v301_v5  ;;  %51 = vperm.xlu1 %235, %v32_v2  }
  0x12   :  { %47 = vperm.xlu0 %233, %v31_v3   ;;  %61 = vperm.xlu2 %236, %v32_v2  }
  0x13   :  { %143 = vmatpush.bf16.msra.mxu0 %v221_v8 }
  0x17   :  { %144 = vmatpush.bf16.msra.mxu0 %v220_v9 }
  0x19   :  { %237 = vset.pattern.permute.xlu1 %v302_v6 }
  0x1a   :  { %239 = vset.pattern.permute.xlu0 %v302_v6  ;;  %67 = vperm.xlu1 %237, %v31_v3  }
  0x1b   :  { %238 = vset.pattern.permute.xlu2 %v302_v6  ;;  %145 = vmatpush.bf16.msra.mxu0 %v219_v10 }
  0x1c   :  { %71 = vperm.xlu2 %238, %v32_v2  }
  0x1f   :  { %146 = vmatpush.bf16.msra.mxu0 %v218_v11 }
  0x23   :  { %147 = vmatpush.bf16.msra.mxu0 %v217_v12 }
  0x27   :  { %148 = vmatpush.bf16.msra.mxu0 %v216_v13 }
  0x63   :  { %v58_v14 = vpop.permute.xlu2 %57 }
  0x64   :  { %vm59_vm2 = vcmp.eq.s32.totalorder %v58_v14, %v34_v18 }
  0x6c   :  { %v62_v19 = vpop.permute.xlu2 %61 }
  0x6d   :  { %v64_v26 = vsel %vm59_vm2, %v62_v19, 0.0 }
  0x76   :  { %v72_v25 = vpop.permute.xlu2 %71 }
  0x7a   :  { %v42_v15 = vpop.permute.xlu1 %41 }
  0x7b   :  { %v37_v16 = vpop.permute.xlu0 %36 }
  0x7c   :  { %vm38_vm1 = vcmp.eq.s32.totalorder %v37_v16, %v34_v18 }
  0x7d   :  { %v44_v23 = vsel %vm38_vm1, %v42_v15, 0.0 }
  0x83   :  { %v52_v20 = vpop.permute.xlu1 %51 }
  0x84   :  { %v48_v21 = vpop.permute.xlu0 %47 }
  0x85   :  { %vm49_vm0 = vcmp.eq.s32.totalorder %v48_v21, %v34_v18 }
  0x86   :  { %v54_v22 = vsel %vm49_vm0, %v52_v20, 0.0 }
  0x87   :  { %v55_v24 = vadd.f32 %v54_v22, %v44_v23 }
  0x89   :  { %v65_v28 = vadd.f32 %v64_v26, %v55_v24 }
  0x8c   :  { %v68_v27 = vpop.permute.xlu1 %67 }
  0x8d   :  { %vm69_vm3 = vcmp.eq.s32.totalorder %v68_v27, %v34_v18 }
  0x8e   :  { %v74_v29 = vsel %vm69_vm3, %v72_v25, 0.0 }
  0x8f   :  { %v75_v30 = vadd.f32 %v74_v29, %v65_v28 }
  0x91   :  { %v76_v31 = vpack.c.bf16 %v75_v30, %v75_v30 }
  0x93   :  { %149 = vmatmul.bf16.vlgmr.msra.gmra.mxu0 %v76_v31 }
 0x110   :  { %v150_v32 = vpop.f32.mrf.mxu0 }
 0x111   :  { %v155_v33 = vsel %vm154_vm4, %v150_v32, -1e+30 }
 0x112   :  { %156 = vmax.xlane.f32.xlu0 %v155_v33 }
 0x118   :  { %v152_v34 = vpop.f32.mrf.mxu0 }
 0x185   :  { %v157_v35 = vpop.xlane.xlu0 %156 }
 0x186   :  { %v158_v36 = vsub.f32 %v155_v33, %v157_v35 }
 0x188   :  { %v159_v37 = vmul.f32 1.442695, %v158_v36 }
 0x18a   :  { %240 = vpow2.f32 %v159_v37 }
 0x190   :  { %v241_v38 = vpop.eup %240 }
 0x191   :  { %161 = vadd.xlane.f32.xlu1 %v241_v38 }
 0x204   :  { %v162_v39 = vpop.xlane.xlu1 %161 }
 0x205   :  { %242 = vlog2.f32 %v162_v39 }
 0x20b   :  { %v243_v40 = vpop.eup %242 }
 0x20c   :  { %v164_v41 = vmul.f32 0.6931472, %v243_v40 }
 0x20e   :  { %v165_v42 = vsub.f32 %v158_v36, %v164_v41 }
 0x210   :  { %166 = vst [vmem:[#allocation5] sm:$0xff] %v165_v42 }
 0x211   :  { %177 = dma.vmem_to_hbm [thread:$0]  %s173_s1, 128, %s175_s24, [#allocation4]  }
 0x212   :  { %294 = dma.done.wait [#allocation4], 128  }
 0x213   :  { %295 = vsyncadd [#allocation4], 4294967168 }
 0x214   :  { %182 = vsyncpa [#allocation3], 1 }
 0x215   :  { %183 = vsyncpa [#allocation4], 1 }

// kernel: tpu_custom_call.1
= control target key start
LH: loop header
LB: loop body
LE: loop exit
PB: predicated region body
PF: predicated region fallthrough
CT: control target
= control target key end

     0   :  { %8 = vsyncpa [#allocation3], 0  ;;  %s336_s0 = inlined_call_operand.vmem [shape: s32[8,4], index: 0, kind: input, shape index: {}]   ;;  %s337_s1 = inlined_call_operand.vmem [shape: f32[8,4], index: 1, kind: input, shape index: {}]   ;;  %s338_s2 = inlined_call_operand.hbm [shape: bf16[128,128], index: 2, kind: input, shape index: {}]   ;;  %s339_s3 = inlined_call_operand.hbm [shape: f32[8,128], index: 3, kind: output, shape index: {}]  }
   0x1   :  { %9 = vsyncpa [#allocation4], 0  ;;  %s18_s14 = sshll.u32 %s338_s2, 4  ;;  %s296_s15 = smov [#allocation2]   ;;  %s19_s14 = int_to_ptr.hbm [resolvable:$true] %s18_s14 }
   0x2   :  { %s20_s16 = sshll.u32 %s296_s15, 4  ;;  %s297_s17 = smov 64   ;;  %s21_s16 = int_to_ptr.vmem [resolvable:$true] %s20_s16 }
   0x3   :  { %s298_s18 = smov 4  }
   0x4   :  { %26 = dma.hbm_to_vmem [thread:$0]  %s19_s14, 1024, %s21_s16, [#allocation3], %s297_s17, %s297_s17, %s298_s18  }
   0x5   :  { %292 = dma.done.wait [#allocation3], 1024  }
   0x6   :  { %293 = vsyncadd [#allocation3], 4294966272  ;;  %v299_v0 = vmov 0   ;;  %v300_v1 = vmov 2   ;;  %v32_v2 = vld [vmem:[%s337_s1] sm:$0xff]  ;;  %v223_v4 = vld [vmem:[#allocation2 + $0x38] sm:$0xff]  ;;  %v33_v17 = vlaneseq }
   0x7   :  { %234 = vset.pattern.permute.xlu1 %v299_v0  ;;  %232 = vset.pattern.permute.xlu0 %v299_v0  ;;  %v31_v3 = vld [vmem:[%s336_s0] sm:$0xff]  ;;  %v301_v5 = vmov 1   ;;  %v302_v6 = vmov 3   ;;  %v222_v7 = vld [vmem:[#allocation2 + $0x30] sm:$0xff]  ;;  %v221_v8 = vld [vmem:[#allocation2 + $0x28] sm:$0xff]  ;;  %s303_s0 = smov [#allocation5]  }
   0x8   :  { %236 = vset.pattern.permute.xlu2 %v300_v1  ;;  %41 = vperm.xlu1 %234, %v32_v2   ;;  %v220_v9 = vld [vmem:[#allocation2 + $0x20] sm:$0xff]  ;;  %v219_v10 = vld [vmem:[#allocation2 + $0x18] sm:$0xff]  ;;  %v218_v11 = vld [vmem:[#allocation2 + $0x10] sm:$0xff]  ;;  %v34_v18 = vand.u32 127, %v33_v17  ;;  %s172_s1 = sshll.u32 %s303_s0, 4  ;;  %s174_s24 = sshll.u32 %s339_s3, 4  ;;  %s173_s1 = int_to_ptr.vmem [resolvable:$true] %s172_s1  ;;  %s175_s24 = int_to_ptr.hbm [resolvable:$true] %s174_s24 }
   0x9   :  { %36 = vperm.xlu0 %232, %v31_v3   ;;  %57 = vperm.xlu2 %236, %v31_v3   ;;  %v217_v12 = vld [vmem:[#allocation2 + $0x8] sm:$0xff]  ;;  %v216_v13 = vld [vmem:[#allocation2] sm:$0xff] }
   0xa   :  { %141 = vmatpush.bf16.msra.mxu0 %v223_v4  ;;  %vm154_vm4 = vcmp.lt.s32.totalorder %v34_v18, 16 }
   0xe   :  { %142 = vmatpush.bf16.msra.mxu0 %v222_v7 }
  0x10   :  { %235 = vset.pattern.permute.xlu1 %v301_v5 }
  0x11   :  { %233 = vset.pattern.permute.xlu0 %v301_v5  ;;  %51 = vperm.xlu1 %235, %v32_v2  }
  0x12   :  { %47 = vperm.xlu0 %233, %v31_v3   ;;  %61 = vperm.xlu2 %236, %v32_v2  }
  0x13   :  { %143 = vmatpush.bf16.msra.mxu0 %v221_v8 }
  0x17   :  { %144 = vmatpush.bf16.msra.mxu0 %v220_v9 }
  0x19   :  { %237 = vset.pattern.permute.xlu1 %v302_v6 }
  0x1a   :  { %239 = vset.pattern.permute.xlu0 %v302_v6  ;;  %67 = vperm.xlu1 %237, %v31_v3  }
  0x1b   :  { %238 = vset.pattern.permute.xlu2 %v302_v6  ;;  %145 = vmatpush.bf16.msra.mxu0 %v219_v10 }
  0x1c   :  { %71 = vperm.xlu2 %238, %v32_v2  }
  0x1f   :  { %146 = vmatpush.bf16.msra.mxu0 %v218_v11 }
  0x23   :  { %147 = vmatpush.bf16.msra.mxu0 %v217_v12 }
  0x27   :  { %148 = vmatpush.bf16.msra.mxu0 %v216_v13 }
  0x63   :  { %v58_v14 = vpop.permute.xlu2 %57 }
  0x64   :  { %vm59_vm2 = vcmp.eq.s32.totalorder %v58_v14, %v34_v18 }
  0x6c   :  { %v62_v19 = vpop.permute.xlu2 %61 }
  0x6d   :  { %v64_v26 = vsel %vm59_vm2, %v62_v19, 0.0 }
  0x76   :  { %v72_v25 = vpop.permute.xlu2 %71 }
  0x7a   :  { %v42_v15 = vpop.permute.xlu1 %41 }
  0x7b   :  { %v37_v16 = vpop.permute.xlu0 %36 }
  0x7c   :  { %vm38_vm1 = vcmp.eq.s32.totalorder %v37_v16, %v34_v18 }
  0x7d   :  { %v44_v23 = vsel %vm38_vm1, %v42_v15, 0.0 }
  0x83   :  { %v52_v20 = vpop.permute.xlu1 %51 }
  0x84   :  { %v48_v21 = vpop.permute.xlu0 %47 }
  0x85   :  { %vm49_vm0 = vcmp.eq.s32.totalorder %v48_v21, %v34_v18 }
  0x86   :  { %v54_v22 = vsel %vm49_vm0, %v52_v20, 0.0 }
  0x87   :  { %v55_v24 = vadd.f32 %v54_v22, %v44_v23 }
  0x89   :  { %v65_v28 = vadd.f32 %v64_v26, %v55_v24 }
  0x8c   :  { %v68_v27 = vpop.permute.xlu1 %67 }
  0x8d   :  { %vm69_vm3 = vcmp.eq.s32.totalorder %v68_v27, %v34_v18 }
  0x8e   :  { %v74_v29 = vsel %vm69_vm3, %v72_v25, 0.0 }
  0x8f   :  { %v75_v30 = vadd.f32 %v74_v29, %v65_v28 }
  0x91   :  { %v76_v31 = vpack.c.bf16 %v75_v30, %v75_v30 }
  0x93   :  { %149 = vmatmul.bf16.vlgmr.msra.gmra.mxu0 %v76_v31 }
 0x110   :  { %v150_v32 = vpop.f32.mrf.mxu0 }
 0x111   :  { %v155_v33 = vsel %vm154_vm4, %v150_v32, -1e+30 }
 0x112   :  { %156 = vmax.xlane.f32.xlu0 %v155_v33 }
 0x118   :  { %v152_v34 = vpop.f32.mrf.mxu0 }
 0x185   :  { %v157_v35 = vpop.xlane.xlu0 %156 }
 0x186   :  { %v158_v36 = vsub.f32 %v155_v33, %v157_v35 }
 0x188   :  { %v159_v37 = vmul.f32 1.442695, %v158_v36 }
 0x18a   :  { %240 = vpow2.f32 %v159_v37 }
 0x190   :  { %v241_v38 = vpop.eup %240 }
 0x191   :  { %161 = vadd.xlane.f32.xlu1 %v241_v38 }
 0x204   :  { %v162_v39 = vpop.xlane.xlu1 %161 }
 0x205   :  { %242 = vlog2.f32 %v162_v39 }
 0x20b   :  { %v243_v40 = vpop.eup %242 }
 0x20c   :  { %v164_v41 = vmul.f32 0.6931472, %v243_v40 }
 0x20e   :  { %v165_v42 = vsub.f32 %v158_v36, %v164_v41 }
 0x210   :  { %166 = vst [vmem:[#allocation5] sm:$0xff] %v165_v42 }
 0x211   :  { %177 = dma.vmem_to_hbm [thread:$0]  %s173_s1, 128, %s175_s24, [#allocation4]  }
 0x212   :  { %294 = dma.done.wait [#allocation4], 128  }
 0x213   :  { %295 = vsyncadd [#allocation4], 4294967168 }
 0x214   :  { %182 = vsyncpa [#allocation3], 1 }
 0x215   :  { %183 = vsyncpa [#allocation4], 1 }

</bundles_post_ra>
